<compile_context>
chip_gen: v6e
topology: v6e:2x2x1
jax: 0.10.0
libtpu: 0.0.40
codegen_flags: <defaults>
</compile_context>

<pallas_src>
import functools

import jax
import jax.numpy as jnp
from jax import lax
from jax.experimental import pallas as pl
from jax.experimental.pallas import tpu as pltpu


def _round_up(x, m):
    return (x + m - 1) // m * m


def _focal_loss_kernel(preds_ref, labels_ref, out_ref, *,
                       alpha, gamma, tile_s, num_classes):
    # Labels arrive as int8/int32; padded rows carry the sentinel value
    # `num_classes`, so no class-select fires on them -> a_t = 0 and e_t = 0
    # -> their loss contribution is exactly 0 (no iota/mask work needed).
    lab = labels_ref[...].astype(jnp.int32)                 # (tile_s, 128)

    # Pass 1: running max over the C class slabs (fresh vlds; only the running
    # max is kept live, so this scales to larger num_classes without spills).
    m = preds_ref[0].astype(jnp.float32)
    for c in range(1, num_classes):
        m = jnp.maximum(m, preds_ref[c].astype(jnp.float32))

    # Pass 2: softmax denominator fused with the per-class "gather" of the
    # target logit / target exp / alpha (pure VPU compares + selects).
    ssum = jnp.zeros_like(m)
    r_t = jnp.zeros_like(m)       # logit of the target class
    e_t = jnp.zeros_like(m)       # exp(logit - m) of the target class
    a_t = jnp.zeros_like(m)       # alpha of the target class
    for c in range(num_classes):
        r = preds_ref[c].astype(jnp.float32)
        e = jnp.exp(r - m)
        ssum = ssum + e
        sel = lab == c
        r_t = jnp.where(sel, r, r_t)
        e_t = jnp.where(sel, e, e_t)
        a_t = jnp.where(sel, jnp.float32(alpha[c]), a_t)

    lse = jnp.log(ssum) + m                                 # (tile_s, 128)
    logp_t = r_t - lse
    # p_t from the already-computed exp (saves one EUP exp vs exp(logp_t));
    # exact divide keeps f32 accuracy; ssum >= e_t >= 0 so p_t stays in [0,1].
    p_t = e_t / ssum

    one_minus = 1.0 - p_t
    if isinstance(gamma, int):
        if gamma == 0:
            mod = jnp.ones_like(one_minus)
        else:
            mod = lax.integer_pow(one_minus, gamma)         # stays on the VPU
    else:
        mod = one_minus ** jnp.float32(gamma)               # float gamma -> EUP pow
    loss = a_t * mod * (-logp_t)                            # (tile_s, 128)

    # Fold the tile into one (8,128) vreg with pure VALU adds (the reshape is
    # native-tile aligned -> layout free). Final reduce happens in the wrapper.
    out_ref[0] = loss.reshape(tile_s // 8, 8, 128).sum(axis=0)


def focal_loss(preds, labels, *, alpha=0.25, gamma=2, num_classes=None,
               size_average=True, tile_rows=1024):
    """preds: (..., C) float (f32 or bf16); labels: (...,) int.

    alpha: scalar (class-0 weight, rest get 1-alpha) or list of length C,
    matching the PyTorch FocalLoss.__init__ semantics.
    tile_rows: sublane rows per grid step; elements per tile = tile_rows*128.
    """
    if num_classes is None:
        num_classes = preds.shape[-1]

    # Per-class alpha as Python constants (closed over -> no tensor input).
    if isinstance(alpha, (list, tuple)):
        assert len(alpha) == num_classes
        alpha_list = tuple(float(a) for a in alpha)
    else:
        assert alpha < 1
        alpha_list = tuple([float(alpha)] + [1.0 - float(alpha)] * (num_classes - 1))

    p2 = preds.reshape(-1, num_classes)
    lab = labels.reshape(-1).astype(jnp.int32)
    n_total = p2.shape[0]
    p_itemsize = p2.dtype.itemsize
    label_dtype = jnp.int8 if num_classes < 128 else jnp.int32
    l_itemsize = jnp.dtype(label_dtype).itemsize

    # --- tile sizing -------------------------------------------------------
    row_align = 32  # int8 labels pack (32,128) natively; also satisfies f32 (8,128)
    s_rows = pl.cdiv(max(n_total, 1), 128)       # sublane rows of 128 elements
    s_rows_a = _round_up(s_rows, row_align)
    tile_s = min(_round_up(int(tile_rows), row_align), s_rows_a)
    # If everything fits in one big tile, split into two so the "parallel"
    # grid axis can shard across both v7x TensorCores (negligible per-step
    # overhead at this size on v5e/v6e).
    if tile_s >= s_rows_a and s_rows >= 256:
        tile_s = _round_up(pl.cdiv(s_rows, 2), row_align)

    # Keep double-buffered blocks + in-kernel temporaries inside a VMEM budget
    # that is safe on every generation (v7x: 64 MiB physical per TensorCore).
    def _vmem_est(ts):
        blk = num_classes * ts * 128 * p_itemsize + ts * 128 * l_itemsize
        return 2 * blk + 18 * ts * 128 * 4       # double-buffer + f32 temps
    budget = 40 << 20
    while tile_s > row_align and _vmem_est(tile_s) > budget:
        tile_s = _round_up(tile_s // 2, row_align)
    tile_s = max(tile_s, row_align)

    s_pad = _round_up(s_rows, tile_s)
    n_pad = s_pad * 128
    num_tiles = s_pad // tile_s

    # --- layout plumbing (done by XLA outside the kernel) --------------------
    # Lane-dense layout: classes on the leading axis, rows over (sublane, lane).
    # allow_input_fusion lets XLA fuse this transpose/pad/reshape into the
    # pallas_call input feed where possible instead of an extra HBM round trip.
    # TODO(synk): if the upstream producer can emit channel-major logits (C, N)
    # directly, drop this transpose entirely (biggest remaining HBM lever).
    pT = jnp.transpose(p2, (1, 0))                                    # (C, N)
    pT = jnp.pad(pT, ((0, 0), (0, n_pad - n_total)))
    preds3d = pT.reshape(num_classes, s_pad, 128)
    # Labels: int8 (less HBM traffic); pad with the sentinel class `num_classes`
    # so padded rows select nothing and contribute exactly 0 (no in-kernel mask).
    lab = jnp.pad(lab, (0, n_pad - n_total), constant_values=num_classes)
    labels3d = lab.astype(label_dtype).reshape(s_pad, 128)

    kernel = functools.partial(
        _focal_loss_kernel,
        alpha=alpha_list, gamma=gamma, tile_s=tile_s, num_classes=num_classes,
    )

    bytes_accessed = (preds3d.size * p_itemsize
                      + labels3d.size * l_itemsize
                      + num_tiles * 8 * 128 * 4)
    cost = pl.CostEstimate(
        flops=(12 + 6 * num_classes) * n_pad,
        transcendentals=(num_classes + 2) * n_pad,
        bytes_accessed=bytes_accessed,
    )
    vmem_limit = int(min(max(_vmem_est(tile_s) + (8 << 20), 32 << 20), 64 << 20))

    partials = pl.pallas_call(
        kernel,
        out_shape=jax.ShapeDtypeStruct((num_tiles, 8, 128), jnp.float32),
        grid_spec=pltpu.PrefetchScalarGridSpec(
            num_scalar_prefetch=0,
            grid=(num_tiles,),
            in_specs=[
                pl.BlockSpec((num_classes, tile_s, 128), lambda i: (0, i, 0)),
                pl.BlockSpec((tile_s, 128), lambda i: (i, 0)),
            ],
            out_specs=pl.BlockSpec((1, 8, 128), lambda i: (i, 0, 0)),
        ),
        compiler_params=pltpu.CompilerParams(
            # Independent tiles -> parallel: lets v7x split the grid across
            # both TensorCores; no cost on single-TC v5e/v6e.
            dimension_semantics=("parallel",),
            vmem_limit_bytes=vmem_limit,
            allow_input_fusion=[True, True],
        ),
        cost_estimate=cost,
    )(preds3d, labels3d)

    total = jnp.sum(partials, dtype=jnp.float32)
    if size_average:
        return total / jnp.float32(n_total)
    return total


def _reference(preds, labels, alpha_vec, gamma, size_average):
    num_classes = preds.shape[-1]
    p2 = preds.reshape(-1, num_classes).astype(jnp.float32)
    l2 = labels.reshape(-1)
    logsoft = jax.nn.log_softmax(p2, axis=1)
    logp_t = jnp.take_along_axis(logsoft, l2[:, None], axis=1)[:, 0]
    p_t = jnp.exp(logp_t)
    a_t = alpha_vec[l2]
    loss = a_t * ((1.0 - p_t) ** gamma) * (-logp_t)
    return jnp.mean(loss) if size_average else jnp.sum(loss)


if __name__ == "__main__":
    num_classes = 3
    key = jax.random.PRNGKey(0)
    kp, kl, kp2, kl2 = jax.random.split(key, 4)

    # Case 1: small shape, scalar alpha, mean reduction (module defaults).
    preds = jax.random.normal(kp, (2, 8, num_classes), jnp.float32)
    labels = jax.random.randint(kl, (2, 8), 0, num_classes, jnp.int32)
    loss = focal_loss(preds, labels, alpha=0.25, gamma=2, size_average=True)
    loss = jax.block_until_ready(loss)
    alpha_vec = jnp.array([0.25, 0.75, 0.75], jnp.float32)
    ref = _reference(preds, labels, alpha_vec, 2, True)
    assert jnp.allclose(loss, ref, rtol=1e-5, atol=1e-6), (loss, ref)

    # Case 2: non-multiple N, list alpha, sum reduction; tile_rows=32 forces
    # 2 grid steps plus sentinel-padded remainder rows in the last tile.
    preds2 = jax.random.normal(kp2, (4, 1200, num_classes), jnp.float32)
    labels2 = jax.random.randint(kl2, (4, 1200), 0, num_classes, jnp.int32)
    loss2 = focal_loss(preds2, labels2, alpha=[0.2, 0.3, 0.5], gamma=2,
                       size_average=False, tile_rows=32)
    loss2 = jax.block_until_ready(loss2)
    ref2 = _reference(preds2, labels2, jnp.array([0.2, 0.3, 0.5], jnp.float32),
                      2, False)
    assert jnp.allclose(loss2, ref2, rtol=1e-5, atol=1e-4), (loss2, ref2)

    print("KERNEL_OK")
</pallas_src>

<mosaic_0001>
module attributes {stable_mosaic.version = 11 : i64} {
  func.func @_focal_loss_kernel(%arg0: i32, %arg1: memref<3x32x128xf32, #tpu.memory_space<vmem>>, %arg2: memref<32x128xi8, #tpu.memory_space<vmem>>, %arg3: memref<1x8x128xf32, #tpu.memory_space<vmem>>) attributes {dimension_semantics = [#tpu.dimension_semantics<parallel>], iteration_bounds = array<i64: 1>, scalar_prefetch = 0 : i64, scratch_operands = 0 : i64, tpu.core_type = #tpu.core_type<tc>, window_params = [{transform_indices = @transform_0, window_bounds = array<i64: 3, 32, 128>}, {transform_indices = @transform_1, window_bounds = array<i64: 32, 128>}, {transform_indices = @transform_2, window_bounds = array<i64: 1, 8, 128>}]} {
    %c0 = arith.constant 0 : index
    %c0_0 = arith.constant 0 : index
    %0 = vector.load %arg2[%c0, %c0_0] : memref<32x128xi8, #tpu.memory_space<vmem>>, vector<32x128xi8>
    %1 = arith.extsi %0 : vector<32x128xi8> to vector<32x128xi32>
    %c0_1 = arith.constant 0 : index
    %c0_2 = arith.constant 0 : index
    %c0_3 = arith.constant 0 : index
    %2 = vector.load %arg1[%c0_1, %c0_2, %c0_3] : memref<3x32x128xf32, #tpu.memory_space<vmem>>, vector<1x32x128xf32>
    %3 = vector.shape_cast %2 : vector<1x32x128xf32> to vector<32x128xf32>
    %c1 = arith.constant 1 : index
    %c0_4 = arith.constant 0 : index
    %c0_5 = arith.constant 0 : index
    %4 = vector.load %arg1[%c1, %c0_4, %c0_5] : memref<3x32x128xf32, #tpu.memory_space<vmem>>, vector<1x32x128xf32>
    %5 = vector.shape_cast %4 : vector<1x32x128xf32> to vector<32x128xf32>
    %6 = arith.maximumf %3, %5 : vector<32x128xf32>
    %c2 = arith.constant 2 : index
    %c0_6 = arith.constant 0 : index
    %c0_7 = arith.constant 0 : index
    %7 = vector.load %arg1[%c2, %c0_6, %c0_7] : memref<3x32x128xf32, #tpu.memory_space<vmem>>, vector<1x32x128xf32>
    %8 = vector.shape_cast %7 : vector<1x32x128xf32> to vector<32x128xf32>
    %9 = arith.maximumf %6, %8 : vector<32x128xf32>
    %cst = arith.constant 0.000000e+00 : f32
    %10 = vector.broadcast %cst : f32 to vector<32x128xf32>
    %cst_8 = arith.constant 0.000000e+00 : f32
    %11 = vector.broadcast %cst_8 : f32 to vector<32x128xf32>
    %cst_9 = arith.constant 0.000000e+00 : f32
    %12 = vector.broadcast %cst_9 : f32 to vector<32x128xf32>
    %cst_10 = arith.constant 0.000000e+00 : f32
    %13 = vector.broadcast %cst_10 : f32 to vector<32x128xf32>
    %c0_11 = arith.constant 0 : index
    %c0_12 = arith.constant 0 : index
    %c0_13 = arith.constant 0 : index
    %14 = vector.load %arg1[%c0_11, %c0_12, %c0_13] : memref<3x32x128xf32, #tpu.memory_space<vmem>>, vector<1x32x128xf32>
    %15 = vector.shape_cast %14 : vector<1x32x128xf32> to vector<32x128xf32>
    %16 = arith.subf %15, %9 : vector<32x128xf32>
    %17 = math.exp %16 : vector<32x128xf32>
    %18 = arith.addf %10, %17 : vector<32x128xf32>
    %c0_i32 = arith.constant 0 : i32
    %19 = vector.broadcast %c0_i32 : i32 to vector<32x128xi32>
    %20 = arith.cmpi eq, %1, %19 : vector<32x128xi32>
    %21 = arith.select %20, %15, %11 : vector<32x128xi1>, vector<32x128xf32>
    %22 = arith.select %20, %17, %12 : vector<32x128xi1>, vector<32x128xf32>
    %cst_14 = arith.constant 2.500000e-01 : f32
    %23 = vector.broadcast %cst_14 : f32 to vector<32x128xf32>
    %24 = arith.select %20, %23, %13 : vector<32x128xi1>, vector<32x128xf32>
    %c1_15 = arith.constant 1 : index
    %c0_16 = arith.constant 0 : index
    %c0_17 = arith.constant 0 : index
    %25 = vector.load %arg1[%c1_15, %c0_16, %c0_17] : memref<3x32x128xf32, #tpu.memory_space<vmem>>, vector<1x32x128xf32>
    %26 = vector.shape_cast %25 : vector<1x32x128xf32> to vector<32x128xf32>
    %27 = arith.subf %26, %9 : vector<32x128xf32>
    %28 = math.exp %27 : vector<32x128xf32>
    %29 = arith.addf %18, %28 : vector<32x128xf32>
    %c1_i32 = arith.constant 1 : i32
    %30 = vector.broadcast %c1_i32 : i32 to vector<32x128xi32>
    %31 = arith.cmpi eq, %1, %30 : vector<32x128xi32>
    %32 = arith.select %31, %26, %21 : vector<32x128xi1>, vector<32x128xf32>
    %33 = arith.select %31, %28, %22 : vector<32x128xi1>, vector<32x128xf32>
    %cst_18 = arith.constant 7.500000e-01 : f32
    %34 = vector.broadcast %cst_18 : f32 to vector<32x128xf32>
    %35 = arith.select %31, %34, %24 : vector<32x128xi1>, vector<32x128xf32>
    %c2_19 = arith.constant 2 : index
    %c0_20 = arith.constant 0 : index
    %c0_21 = arith.constant 0 : index
    %36 = vector.load %arg1[%c2_19, %c0_20, %c0_21] : memref<3x32x128xf32, #tpu.memory_space<vmem>>, vector<1x32x128xf32>
    %37 = vector.shape_cast %36 : vector<1x32x128xf32> to vector<32x128xf32>
    %38 = arith.subf %37, %9 : vector<32x128xf32>
    %39 = math.exp %38 : vector<32x128xf32>
    %40 = arith.addf %29, %39 : vector<32x128xf32>
    %c2_i32 = arith.constant 2 : i32
    %41 = vector.broadcast %c2_i32 : i32 to vector<32x128xi32>
    %42 = arith.cmpi eq, %1, %41 : vector<32x128xi32>
    %43 = arith.select %42, %37, %32 : vector<32x128xi1>, vector<32x128xf32>
    %44 = arith.select %42, %39, %33 : vector<32x128xi1>, vector<32x128xf32>
    %cst_22 = arith.constant 7.500000e-01 : f32
    %45 = vector.broadcast %cst_22 : f32 to vector<32x128xf32>
    %46 = arith.select %42, %45, %35 : vector<32x128xi1>, vector<32x128xf32>
    %47 = math.log %40 : vector<32x128xf32>
    %48 = arith.addf %47, %9 : vector<32x128xf32>
    %49 = arith.subf %43, %48 : vector<32x128xf32>
    %50 = arith.divf %44, %40 : vector<32x128xf32>
    %cst_23 = arith.constant 1.000000e+00 : f32
    %51 = vector.broadcast %cst_23 : f32 to vector<32x128xf32>
    %52 = arith.subf %51, %50 : vector<32x128xf32>
    %53 = arith.mulf %52, %52 : vector<32x128xf32>
    %54 = arith.mulf %46, %53 : vector<32x128xf32>
    %cst_24 = arith.constant 0.000000e+00 : f32
    %55 = vector.broadcast %cst_24 : f32 to vector<32x128xf32>
    %56 = arith.subf %55, %49 : vector<32x128xf32>
    %57 = arith.mulf %54, %56 : vector<32x128xf32>
    %58 = vector.shape_cast %57 : vector<32x128xf32> to vector<4x8x128xf32>
    %cst_25 = arith.constant dense<0.000000e+00> : vector<8x128xf32>
    %59 = vector.multi_reduction <add>, %58, %cst_25 [0] : vector<4x8x128xf32> to vector<8x128xf32>
    %c0_26 = arith.constant 0 : index
    %c0_27 = arith.constant 0 : index
    %c0_28 = arith.constant 0 : index
    %60 = vector.load %arg3[%c0_26, %c0_27, %c0_28] : memref<1x8x128xf32, #tpu.memory_space<vmem>>, vector<1x8x128xf32>
    %61 = vector.shape_cast %60 : vector<1x8x128xf32> to vector<8x128xf32>
    %62 = vector.shape_cast %59 : vector<8x128xf32> to vector<1x8x128xf32>
    tpu.vector_store %arg3[%c0_26, %c0_27, %c0_28], %62 {strides = array<i32>} : memref<1x8x128xf32, #tpu.memory_space<vmem>>, vector<1x8x128xf32>,
    return
  }
  func.func @transform_0(%arg0: i32) -> (i32, i32, i32) {
    %c0_i32 = arith.constant 0 : i32
    %c0_i32_0 = arith.constant 0 : i32
    %c0_i32_1 = arith.constant 0 : i32
    return %c0_i32, %arg0, %c0_i32_0 : i32, i32, i32
  }
  func.func @transform_1(%arg0: i32) -> (i32, i32) {
    %c0_i32 = arith.constant 0 : i32
    %c0_i32_0 = arith.constant 0 : i32
    return %arg0, %c0_i32 : i32, i32
  }
  func.func @transform_2(%arg0: i32) -> (i32, i32, i32) {
    %c0_i32 = arith.constant 0 : i32
    %c0_i32_0 = arith.constant 0 : i32
    %c0_i32_1 = arith.constant 0 : i32
    return %arg0, %c0_i32, %c0_i32_0 : i32, i32, i32
  }
}

</mosaic_0001>

<bundles_post_ra>
// kernel: tpu_custom_call.1
= control target key start
LH: loop header
LB: loop body
LE: loop exit
PB: predicated region body
PF: predicated region fallthrough
CT: control target
= control target key end

     0   :  { %7 = vsyncpa [#allocation3], 0  ;;  %s545_s0 = inlined_call_operand.hbm [shape: f32[3,32,128], index: 0, kind: input, shape index: {}]   ;;  %s546_s1 = inlined_call_operand.hbm [shape: s8[32,128], index: 1, kind: input, shape index: {}]   ;;  %s547_s2 = inlined_call_operand.hbm [shape: f32[1,8,128], index: 2, kind: output, shape index: {}]  }
   0x1   :  { %8 = vsyncpa [#allocation6], 0 }
   0x2   :  { %9 = vsyncpa [#allocation4], 0  ;;  %s337_s9 = smov [#allocation2]  }
   0x3   :  { %s15_s10 = sshll.u32 %s337_s9, 4  ;;  %s16_s10 = int_to_ptr.vmem [resolvable:$true] %s15_s10 }
   0x4   :  { %s279_s11 = scalar_lea.vmem %s16_s10, 1536  ;;  %p284_p1 = scmp.lt.s32.totalorder %s16_s10, %s16_s10 }
   0x5   :  { %p280_p0 = scmp.ne.s32.totalorder %s16_s10, %s279_s11  ;;  %p285_p2 = scmp.lt.s32.totalorder %s279_s11, %s279_s11 }
   0x7   :  { %p286_p3 = por %p285_p2, %p284_p1 }
   0x9   :  { %p287_p4 = pnand %p286_p3, %p280_p0 }
   0xb   :  { %290 = shalt.err (!%p287_p4)
}
   0xc   :  { %s338_s12 = smov 128   ;;  %s339_s13 = smov 8  }
   0xd   :  { %21 = dma.hbm_to_vmem [thread:$0]  %s545_s0, 1536, %s16_s10, [#allocation3], %s338_s12, %s338_s12, %s339_s13  }
   0xe   :  { %s340_s16 = smov [#allocation5]  }
   0xf   :  { %s28_s17 = sshll.u32 %s340_s16, 4  ;;  %s29_s17 = int_to_ptr.vmem [resolvable:$true] %s28_s17 }
  0x10   :  { %s299_s18 = scalar_lea.vmem %s29_s17, 128  ;;  %p304_p6 = scmp.lt.s32.totalorder %s29_s17, %s29_s17 }
  0x11   :  { %p300_p5 = scmp.ne.s32.totalorder %s29_s17, %s299_s18  ;;  %p305_p7 = scmp.lt.s32.totalorder %s299_s18, %s299_s18 }
  0x13   :  { %p306_p8 = por %p305_p7, %p304_p6 }
  0x15   :  { %p307_p9 = pnand %p306_p8, %p300_p5 }
  0x17   :  { %310 = shalt.err (!%p307_p9)
}
  0x18   :  { %31 = dma.hbm_to_vmem [thread:$0]  %s546_s1, 128, %s29_s17, [#allocation6]  }
  0x19   :  { %331 = dma.done.wait [#allocation3], 1536  }
  0x1a   :  { %332 = vsyncadd [#allocation3], 4294965760 }
  0x1b   :  { %333 = dma.done.wait [#allocation6], 128  }
  0x1c   :  { %334 = vsyncadd [#allocation6], 4294967168  ;;  %v364_v0 = vld [vmem:[#allocation2] sm:$0xff]  ;;  %v366_v1 = vld [vmem:[#allocation2 + $0x8] sm:$0xff]  ;;  %s342_s0 = smov [#allocation7]  }
  0x1d   :  { %v368_v2 = vld [vmem:[#allocation2 + $0x10] sm:$0xff]  ;;  %v370_v3 = vld [vmem:[#allocation2 + $0x18] sm:$0xff]  ;;  %v372_v4 = vld [vmem:[#allocation2 + $0x20] sm:$0xff]  ;;  %s215_s1 = sshll.u32 %s342_s0, 4  ;;  %s216_s1 = int_to_ptr.vmem [resolvable:$true] %s215_s1 }
  0x1e   :  { %v374_v5 = vld [vmem:[#allocation2 + $0x28] sm:$0xff]  ;;  %v376_v6 = vld [vmem:[#allocation2 + $0x30] sm:$0xff]  ;;  %v378_v7 = vld [vmem:[#allocation2 + $0x38] sm:$0xff]  ;;  %v52_v8 = vmax.f32 %v364_v0, %v372_v4  ;;  %s311_s21 = scalar_lea.vmem %s216_s1, 128  ;;  %p316_p11 = scmp.lt.s32.totalorder %s216_s1, %s216_s1 }
  0x1f   :  { %v53_v9 = vmax.f32 %v366_v1, %v374_v5  ;;  %v54_v10 = vmax.f32 %v368_v2, %v376_v6  ;;  %v55_v11 = vmax.f32 %v370_v3, %v378_v7  ;;  %v388_v12 = vld [vmem:[#allocation2 + $0x40] sm:$0xff]  ;;  %v390_v13 = vld [vmem:[#allocation2 + $0x48] sm:$0xff]  ;;  %v392_v14 = vld [vmem:[#allocation2 + $0x50] sm:$0xff]  ;;  %p312_p10 = scmp.ne.s32.totalorder %s216_s1, %s311_s21  ;;  %p317_p12 = scmp.lt.s32.totalorder %s311_s21, %s311_s21 }
  0x20   :  { %v394_v15 = vld [vmem:[#allocation2 + $0x58] sm:$0xff]  ;;  %v397_v16 = vmax.f32 %v52_v8, %v388_v12  ;;  %v38_v58 = vld [vmem:[#allocation5] sm:$0xff] }
  0x21   :  { %v400_v17 = vmax.f32 %v53_v9, %v390_v13  ;;  %v403_v18 = vmax.f32 %v54_v10, %v392_v14  ;;  %v406_v19 = vmax.f32 %v55_v11, %v394_v15  ;;  %v446_v8 = vunpack.c.0.s8 %v38_v58  ;;  %p318_p13 = por %p317_p12, %p316_p11 }
  0x22   :  { %v65_v20 = vsub.f32 %v364_v0, %v397_v16  ;;  %v97_v28 = vsub.f32 %v372_v4, %v397_v16  ;;  %v129_v36 = vsub.f32 %v388_v12, %v397_v16  ;;  %v449_v10 = vunpack.c.1.s8 %v38_v58 }
  0x23   :  { %v66_v21 = vsub.f32 %v366_v1, %v400_v17  ;;  %v67_v22 = vsub.f32 %v368_v2, %v403_v18  ;;  %v68_v23 = vsub.f32 %v370_v3, %v406_v19  ;;  %v98_v29 = vsub.f32 %v374_v5, %v400_v17  ;;  %p319_p0 = pnand %p318_p13, %p312_p10 }
  0x24   :  { %v69_v24 = vmul.f32 1.442695, %v65_v20  ;;  %v99_v30 = vsub.f32 %v376_v6, %v403_v18  ;;  %v100_v31 = vsub.f32 %v378_v7, %v406_v19  ;;  %v101_v32 = vmul.f32 1.442695, %v97_v28 }
  0x25   :  { %v71_v25 = vmul.f32 1.442695, %v66_v21  ;;  %v73_v26 = vmul.f32 1.442695, %v67_v22  ;;  %v75_v27 = vmul.f32 1.442695, %v68_v23  ;;  %v130_v37 = vsub.f32 %v390_v13, %v400_v17 }
  0x26   :  { %231 = vpow2.f32 %v69_v24  ;;  %v103_v33 = vmul.f32 1.442695, %v98_v29  ;;  %v105_v34 = vmul.f32 1.442695, %v99_v30  ;;  %v107_v35 = vmul.f32 1.442695, %v100_v31 }
  0x27   :  { %233 = vpow2.f32 %v71_v25  ;;  %v131_v38 = vsub.f32 %v392_v14, %v403_v18  ;;  %v132_v39 = vsub.f32 %v394_v15, %v406_v19  ;;  %v133_v40 = vmul.f32 1.442695, %v129_v36 }
  0x28   :  { %235 = vpow2.f32 %v73_v26  ;;  %v135_v41 = vmul.f32 1.442695, %v130_v37  ;;  %v451_v11 = vunpack.c.2.s8 %v38_v58  ;;  %v453_v20 = vunpack.c.3.s8 %v38_v58 }
  0x29   :  { %237 = vpow2.f32 %v75_v27  ;;  %v137_v42 = vmul.f32 1.442695, %v131_v38  ;;  %v139_v43 = vmul.f32 1.442695, %v132_v39  ;;  %vm81_vm0 = vcmp.eq.s32.totalorder %v446_v8, 0 }
  0x2a   :  { %239 = vpow2.f32 %v101_v32  ;;  %vm82_vm1 = vcmp.eq.s32.totalorder %v449_v10, 0  ;;  %vm83_vm2 = vcmp.eq.s32.totalorder %v451_v11, 0  ;;  %vm84_vm3 = vcmp.eq.s32.totalorder %v453_v20, 0 }
  0x2b   :  { %241 = vpow2.f32 %v103_v33  ;;  %v85_v21 = vsel %vm81_vm0, %v364_v0, 0.0  ;;  %v86_v22 = vsel %vm82_vm1, %v366_v1, 0.0  ;;  %v87_v23 = vsel %vm83_vm2, %v368_v2, 0.0 }
  0x2c   :  { %243 = vpow2.f32 %v105_v34  ;;  %v88_v24 = vsel %vm84_vm3, %v370_v3, 0.0  ;;  %v341_v25 = vmov 0.0   ;;  %vm113_vm4 = vcmp.eq.s32.totalorder %v446_v8, 1 }
  0x2d   :  { %245 = vpow2.f32 %v107_v35  ;;  %v93_v26 = vsel %vm81_vm0, 0.25, %v341_v25  ;;  %v94_v27 = vsel %vm82_vm1, 0.25, %v341_v25  ;;  %v95_v0 = vsel %vm83_vm2, 0.25, %v341_v25 }
  0x2e   :  { %247 = vpow2.f32 %v133_v40  ;;  %v96_v1 = vsel %vm84_vm3, 0.25, %v341_v25  ;;  %vm114_vm5 = vcmp.eq.s32.totalorder %v449_v10, 1  ;;  %vm115_vm6 = vcmp.eq.s32.totalorder %v451_v11, 1 }
  0x2f   :  { %249 = vpow2.f32 %v135_v41  ;;  %vm116_vm7 = vcmp.eq.s32.totalorder %v453_v20, 1  ;;  %v117_v3 = vsel %vm113_vm4, %v372_v4, %v85_v21  ;;  %v118_v30 = vsel %vm114_vm5, %v374_v5, %v86_v22 }
  0x30   :  { %251 = vpow2.f32 %v137_v42  ;;  %v119_v31 = vsel %vm115_vm6, %v376_v6, %v87_v23  ;;  %v120_v32 = vsel %vm116_vm7, %v378_v7, %v88_v24  ;;  %v125_v35 = vsel %vm113_vm4, 0.75, %v93_v26 }
  0x31   :  { %253 = vpow2.f32 %v139_v43  ;;  %vm145_vm8 = vcmp.eq.s32.totalorder %v446_v8, 2  ;;  %v126_v37 = vsel %vm114_vm5, 0.75, %v94_v27  ;;  %vm146_vm9 = vcmp.eq.s32.totalorder %v449_v10, 2 }
  0x32   :  { %vm147_vm10 = vcmp.eq.s32.totalorder %v451_v11, 2  ;;  %vm148_vm11 = vcmp.eq.s32.totalorder %v453_v20, 2  ;;  %v149_v7 = vsel %vm145_vm8, %v388_v12, %v117_v3  ;;  %v150_v41 = vsel %vm146_vm9, %v390_v13, %v118_v30 }
  0x33   :  { %v232_v44 = vpop.eup %231  ;;  %v151_v12 = vsel %vm147_vm10, %v392_v14, %v119_v31  ;;  %v152_v13 = vsel %vm148_vm11, %v394_v15, %v120_v32  ;;  %v127_v15 = vsel %vm115_vm6, 0.75, %v95_v0  ;;  %v158_v22 = vsel %vm146_vm9, 0.75, %v126_v37 }
  0x34   :  { %v234_v45 = vpop.eup %233  ;;  %v89_v28 = vsel %vm81_vm0, %v232_v44, 0.0  ;;  %v159_v25 = vsel %vm147_vm10, 0.75, %v127_v15 }
  0x35   :  { %v236_v46 = vpop.eup %235  ;;  %v90_v2 = vsel %vm82_vm1, %v234_v45, 0.0 }
  0x36   :  { %v238_v47 = vpop.eup %237  ;;  %v91_v29 = vsel %vm83_vm2, %v236_v46, 0.0 }
  0x37   :  { %v240_v48 = vpop.eup %239  ;;  %v92_v33 = vsel %vm84_vm3, %v238_v47, 0.0 }
  0x38   :  { %v242_v49 = vpop.eup %241  ;;  %v109_v52 = vadd.f32 %v240_v48, %v232_v44  ;;  %v121_v34 = vsel %vm113_vm4, %v240_v48, %v89_v28 }
  0x39   :  { %v244_v50 = vpop.eup %243  ;;  %v110_v53 = vadd.f32 %v242_v49, %v234_v45  ;;  %v122_v36 = vsel %vm114_vm5, %v242_v49, %v90_v2 }
  0x3a   :  { %v432_v51 = vpop.eup %245  ;;  %v111_v54 = vadd.f32 %v244_v50, %v236_v46  ;;  %v123_v6 = vsel %vm115_vm6, %v244_v50, %v91_v29 }
  0x3b   :  { %v434_v55 = vpop.eup %247  ;;  %v112_v56 = vadd.f32 %v432_v51, %v238_v47  ;;  %v124_v40 = vsel %vm116_vm7, %v432_v51, %v92_v33 }
  0x3c   :  { %v437_v57 = vpop.eup %249  ;;  %v141_v59 = vadd.f32 %v434_v55, %v109_v52  ;;  %v153_v42 = vsel %vm145_vm8, %v434_v55, %v121_v34 }
  0x3d   :  { %v440_v60 = vpop.eup %251  ;;  %v142_v61 = vadd.f32 %v437_v57, %v110_v53  ;;  %v154_v45 = vsel %vm146_vm9, %v437_v57, %v122_v36 }
  0x3e   :  { %v443_v62 = vpop.eup %253  ;;  %v143_v63 = vadd.f32 %v440_v60, %v111_v54  ;;  %255 = vlog2.f32 %v141_v59  ;;  %v155_v49 = vsel %vm147_vm10, %v440_v60, %v123_v6 }
  0x3f   :  { %v144_v9 = vadd.f32 %v443_v62, %v112_v56  ;;  %257 = vlog2.f32 %v142_v61  ;;  %v156_v52 = vsel %vm148_vm11, %v443_v62, %v124_v40 }
  0x40   :  { %259 = vlog2.f32 %v143_v63 }
  0x41   :  { %261 = vlog2.f32 %v144_v9 }
  0x42   :  { %263 = vrcp.f32 %v141_v59 }
  0x43   :  { %265 = vrcp.f32 %v142_v61 }
  0x44   :  { %267 = vrcp.f32 %v143_v63 }
  0x45   :  { %269 = vrcp.f32 %v144_v9 }
  0x4b   :  { %v256_v4 = vpop.eup %255 }
  0x4c   :  { %v258_v5 = vpop.eup %257  ;;  %v162_v38 = vmul.f32 0.6931472, %v256_v4 }
  0x4d   :  { %v260_v39 = vpop.eup %259  ;;  %v164_v43 = vmul.f32 0.6931472, %v258_v5 }
  0x4e   :  { %v262_v44 = vpop.eup %261  ;;  %v166_v46 = vmul.f32 0.6931472, %v260_v39  ;;  %v169_v47 = vadd.f32 %v162_v38, %v397_v16 }
  0x4f   :  { %v264_v48 = vpop.eup %263  ;;  %v168_v50 = vmul.f32 0.6931472, %v262_v44  ;;  %v170_v51 = vadd.f32 %v164_v43, %v400_v17  ;;  %v128_v17 = vsel %vm116_vm7, 0.75, %v96_v1 }
  0x50   :  { %v266_v14 = vpop.eup %265  ;;  %v171_v53 = vadd.f32 %v166_v46, %v403_v18  ;;  %v173_v16 = vsub.f32 %v149_v7, %v169_v47  ;;  %v178_v54 = vmul.f32 %v264_v48, %v153_v42  ;;  %v157_v18 = vsel %vm145_vm8, 0.75, %v125_v35 }
  0x51   :  { %v268_v55 = vpop.eup %267  ;;  %v172_v56 = vadd.f32 %v168_v50, %v406_v19  ;;  %v174_v57 = vsub.f32 %v150_v41, %v170_v51  ;;  %v180_v58 = vmul.f32 %v266_v14, %v154_v45  ;;  %v160_v28 = vsel %vm148_vm11, 0.75, %v128_v17 }
  0x52   :  { %v270_v59 = vpop.eup %269  ;;  %v175_v60 = vsub.f32 %v151_v12, %v171_v53  ;;  %v182_v61 = vmul.f32 %v268_v55, %v155_v49  ;;  %v185_v63 = vsub.f32 1.0, %v178_v54  ;;  %v197_v24 = vsub.f32 0.0, %v173_v16 }
  0x53   :  { %v176_v62 = vsub.f32 %v152_v13, %v172_v56  ;;  %v184_v9 = vmul.f32 %v270_v59, %v156_v52  ;;  %v186_v21 = vsub.f32 1.0, %v180_v58  ;;  %v198_v0 = vsub.f32 0.0, %v174_v57 }
  0x54   :  { %v187_v23 = vsub.f32 1.0, %v182_v61  ;;  %v189_v19 = vmul.f32 %v185_v63, %v185_v63  ;;  %v199_v2 = vsub.f32 0.0, %v175_v60 }
  0x55   :  { %v188_v26 = vsub.f32 1.0, %v184_v9  ;;  %v190_v27 = vmul.f32 %v186_v21, %v186_v21  ;;  %v200_v30 = vsub.f32 0.0, %v176_v62 }
  0x56   :  { %v191_v8 = vmul.f32 %v187_v23, %v187_v23  ;;  %v193_v1 = vmul.f32 %v189_v19, %v157_v18 }
  0x57   :  { %v192_v3 = vmul.f32 %v188_v26, %v188_v26  ;;  %v194_v29 = vmul.f32 %v190_v27, %v158_v22 }
  0x58   :  { %v195_v10 = vmul.f32 %v191_v8, %v159_v25  ;;  %v201_v31 = vmul.f32 %v197_v24, %v193_v1 }
  0x59   :  { %v196_v32 = vmul.f32 %v192_v3, %v160_v28  ;;  %v202_v33 = vmul.f32 %v198_v0, %v194_v29 }
  0x5a   :  { %v203_v34 = vmul.f32 %v199_v2, %v195_v10 }
  0x5b   :  { %v204_v35 = vmul.f32 %v200_v30, %v196_v32  ;;  %v205_v11 = vadd.f32 %v202_v33, %v201_v31 }
  0x5d   :  { %v206_v4 = vadd.f32 %v205_v11, %v203_v34 }
  0x5f   :  { %v207_v36 = vadd.f32 %v206_v4, %v204_v35 }
  0x61   :  { %208 = vst [vmem:[#allocation7] sm:$0xff] %v207_v36 }
  0x62   :  { %322 = shalt.err (!%p319_p0)
}
  0x63   :  { %218 = dma.vmem_to_hbm [thread:$0]  %s216_s1, 128, %s547_s2, [#allocation4]  }
  0x64   :  { %335 = dma.done.wait [#allocation4], 128  }
  0x65   :  { %336 = vsyncadd [#allocation4], 4294967168 }
  0x66   :  { %222 = vsyncpa [#allocation3], 1 }
  0x67   :  { %223 = vsyncpa [#allocation6], 1 }
  0x68   :  { %224 = vsyncpa [#allocation4], 1 }

</bundles_post_ra>
